<compile_context>
chip_gen: v6e
topology: v6e:2x2x1
jax: 0.10.0
libtpu: 0.0.40
codegen_flags: <defaults>
</compile_context>

<pallas_src>
import jax
import jax.numpy as jnp
from jax import lax
from jax.experimental import pallas as pl
from jax.experimental.pallas import tpu as pltpu

BN_EPS = 1e-5


def qnet_kernel(x_ref, w1_ref, w2ws_ref, w3p_ref, vec_ref, o_ref,
                x1_res, y_res, stats1, stats2, c1_ref, c2_ref, bn1_ref, bn2_ref):
    p = pl.program_id(0)            # phase
    t = pl.program_id(1)            # batch tile
    TILE_B = x_ref.shape[0]
    B = x1_res.shape[0]
    H = w1_ref.shape[1]
    S2 = w2ws_ref.shape[1]          # 2 * s_plane == 128
    S = S2 // 2
    A = o_ref.shape[1]
    inv_b = 1.0 / B
    inv_tile = 1.0 / TILE_B

    row0 = pl.multiple_of(t * TILE_B, TILE_B)
    ones_t = jnp.ones((1, TILE_B), jnp.float32)     # MXU-side batch reduction

    # --------------- phase 0: fc1 (bias dead under BN), bn1 statistics --------
    @pl.when(p == 0)
    def _phase0():
        x1 = jnp.dot(x_ref[...], w1_ref[...],
                     preferred_element_type=jnp.float32)            # [TB, H] f32
        x1_res[pl.ds(row0, TILE_B), :] = x1

        @pl.when(t == 0)
        def _():
            # shifted-variance anchor = first-tile mean (fights cancellation)
            c1_ref[...] = jnp.dot(ones_t, x1,
                                  preferred_element_type=jnp.float32) * inv_tile
            stats1[...] = jnp.zeros_like(stats1)

        xc = x1 - c1_ref[...]
        stats1[...] += jnp.dot(ones_t, jnp.concatenate([xc, xc * xc], axis=1),
                               preferred_element_type=jnp.float32)  # [1, 2H]

    # --------------- phase 1: finalize bn1, fused fc2||skip, bn2 statistics ---
    @pl.when(p == 1)
    def _phase1():
        @pl.when(t == 0)
        def _():
            s = stats1[...] * inv_b
            mc, ex2c = s[:, 0:H], s[:, H:]
            var1 = jnp.maximum(ex2c - mc * mc, 0.0)
            mu1 = c1_ref[...] + mc
            g1, be1 = vec_ref[0:1, 0:H], vec_ref[1:2, 0:H]
            scale1 = g1 * lax.rsqrt(var1 + BN_EPS)
            bn1_ref[0:1, :] = scale1
            bn1_ref[1:2, :] = be1 - mu1 * scale1

        x1 = x1_res[pl.ds(row0, TILE_B), :]
        x1n = jnp.maximum(x1 * bn1_ref[0:1, :] + bn1_ref[1:2, :], 0.0)  # f32
        y = jnp.dot(x1n.astype(w2ws_ref.dtype), w2ws_ref[...],
                    preferred_element_type=jnp.float32)             # [TB, 2S] f32
        y_res[pl.ds(row0, TILE_B), :] = y

        @pl.when(t == 0)
        def _():
            c2_ref[...] = jnp.dot(ones_t, y,
                                  preferred_element_type=jnp.float32) * inv_tile
            stats2[...] = jnp.zeros_like(stats2)

        yc = y - c2_ref[...]
        stats2[...] += jnp.dot(ones_t, jnp.concatenate([yc, yc * yc], axis=1),
                               preferred_element_type=jnp.float32)  # [1, 2*2S]

    # --------------- phase 2: finalize bn2, skip add, fc3, store --------------
    @pl.when(p == 2)
    def _phase2():
        @pl.when(t == 0)
        def _():
            s = stats2[...] * inv_b
            mc, ex2c = s[:, 0:S2], s[:, S2:]
            var2 = jnp.maximum(ex2c - mc * mc, 0.0)
            mu2 = c2_ref[...] + mc
            g2p, be2p, bsp = vec_ref[2:3, :], vec_ref[3:4, :], vec_ref[4:5, :]
            fc2_half = lax.broadcasted_iota(jnp.int32, (1, S2), 1) < S
            # [scale2 | 1]: fc2 lanes get the BN scale, skip lanes pass through.
            scale = jnp.where(fc2_half, g2p * lax.rsqrt(var2 + BN_EPS), 1.0)
            shift = jnp.where(fc2_half, be2p - mu2 * scale + bsp, 0.0)
            bn2_ref[0:1, :] = scale
            bn2_ref[1:2, :] = shift

        y = y_res[pl.ds(row0, TILE_B), :]
        ys = y * bn2_ref[0:1, :]                       # [x2*scale2 | x1_proj]
        # Combine halves with one lane rotation (XLU) instead of 64-lane slices.
        h = jnp.maximum(ys + pltpu.roll(ys, shift=S, axis=1) + bn2_ref[1:2, :], 0.0)
        b3 = vec_ref[5:6, 0:A]
        out = jnp.dot(h.astype(w3p_ref.dtype), w3p_ref[...],
                      preferred_element_type=jnp.float32) + b3       # [TB, A]
        o_ref[...] = jnp.maximum(out, 0.0)


def pack_params(p, action_size):
    """Build the packed (bf16 weight / f32 vector) kernel operands."""
    H = p["w1"].shape[1]
    S = p["w2"].shape[1]
    A = action_size
    S2 = 2 * S
    assert S2 == 128 and H <= 128 and A <= 128
    w1 = p["w1"].astype(jnp.bfloat16)                                    # [D, H]
    w2ws = jnp.concatenate([p["w2"], p["ws"]], axis=1).astype(jnp.bfloat16)  # [H, 2S]
    # fc3 weights zero-ROW-padded to 2S rows (skip half of h contributes 0).
    w3p = jnp.zeros((S2, A), jnp.float32).at[:S, :].set(p["w3"]).astype(jnp.bfloat16)
    vecs = jnp.zeros((8, 128), jnp.float32)
    vecs = vecs.at[0, :H].set(p["g1"][0])
    vecs = vecs.at[1, :H].set(p["be1"][0])
    vecs = vecs.at[2, :S].set(p["g2"][0])
    vecs = vecs.at[3, :S].set(p["be2"][0])
    vecs = vecs.at[4, :S].set(p["bs"][0])
    vecs = vecs.at[5, :A].set(p["b3"][0])
    return w1, w2ws, w3p, vecs


def _pick_tile(B):
    for t in (512, 256, 128, 64, 32, 16, 8):
        if B >= t and B % t == 0:
            return t
    return B


def qnet_forward(state, packed, action_size, tile_b=None):
    """state: [B, D] float32; packed: (w1, w2ws, w3p, vecs). Returns [B, A] f32."""
    w1, w2ws, w3p, vecs = packed
    B, D = state.shape
    H = w1.shape[1]
    S2 = w2ws.shape[1]
    A = action_size
    assert S2 == 128
    if tile_b is None:
        tile_b = _pick_tile(B)
    assert B % tile_b == 0
    n_tiles = B // tile_b

    x_bf = state.astype(jnp.bfloat16)          # halve input DMA bytes

    def x_map(p, t):                           # stream input only in phase 0
        return (jnp.where(p == 0, t, 0), 0)

    def const_map(p, t):                       # weights stay VMEM-resident
        return (0, 0)

    def out_map(p, t):                         # write output only in phase 2
        return (jnp.where(p == 2, t, 0), 0)

    resident_bytes = B * (H + S2) * 4
    vmem_limit = int(min(max(2 * resident_bytes + (8 << 20), 16 << 20), 48 << 20))
    assert resident_bytes < (48 << 20), "chunk the batch across calls"  # TODO(synk)

    out = pl.pallas_call(
        qnet_kernel,
        out_shape=jax.ShapeDtypeStruct((B, A), jnp.float32),
        grid_spec=pltpu.PrefetchScalarGridSpec(
            num_scalar_prefetch=0,
            grid=(3, n_tiles),
            in_specs=[
                pl.BlockSpec((tile_b, D), x_map),
                pl.BlockSpec((D, H), const_map),
                pl.BlockSpec((H, S2), const_map),
                pl.BlockSpec((S2, A), const_map),
                pl.BlockSpec((8, 128), const_map),
            ],
            out_specs=pl.BlockSpec((tile_b, A), out_map),
            scratch_shapes=[
                pltpu.VMEM((B, H), jnp.float32),        # resident fc1 pre-acts
                pltpu.VMEM((B, S2), jnp.float32),       # resident fc2||skip pre-acts
                pltpu.VMEM((1, 2 * H), jnp.float32),    # bn1 shifted sum/sumsq
                pltpu.VMEM((1, 2 * S2), jnp.float32),   # bn2 shifted sum/sumsq
                pltpu.VMEM((1, H), jnp.float32),        # bn1 variance anchor c1
                pltpu.VMEM((1, S2), jnp.float32),       # bn2 variance anchor c2
                pltpu.VMEM((2, H), jnp.float32),        # bn1 folded scale/shift
                pltpu.VMEM((2, S2), jnp.float32),       # bn2 folded scale/shift
            ],
        ),
        compiler_params=pltpu.CompilerParams(
            dimension_semantics=("arbitrary", "arbitrary"),
            vmem_limit_bytes=vmem_limit,
        ),
    )(x_bf, w1, w2ws, w3p, vecs)
    return out


# ---------------------------------------------------------------------------
# Deterministic PyTorch-style init (uniform(-1/sqrt(fan_in), ...)), stored
# pre-transposed as [in, out]; biases / BN params stored as [1, F].
# ---------------------------------------------------------------------------
def init_params(key, input_dim, action_size):
    h_plane = input_dim // 2
    s_plane = 64

    def linear(key, fan_in, fan_out):
        k1, k2 = jax.random.split(key)
        bound = 1.0 / jnp.sqrt(fan_in)
        w = jax.random.uniform(k1, (fan_in, fan_out), jnp.float32, -bound, bound)
        b = jax.random.uniform(k2, (1, fan_out), jnp.float32, -bound, bound)
        return w, b

    k1, k2, k3, k4 = jax.random.split(key, 4)
    w1, b1 = linear(k1, input_dim, h_plane)
    w2, b2 = linear(k2, h_plane, s_plane)
    ws, bs = linear(k3, h_plane, s_plane)
    w3, b3 = linear(k4, s_plane, action_size)

    return dict(
        w1=w1, b1=b1,
        g1=jnp.ones((1, h_plane), jnp.float32), be1=jnp.zeros((1, h_plane), jnp.float32),
        w2=w2, b2=b2,
        g2=jnp.ones((1, s_plane), jnp.float32), be2=jnp.zeros((1, s_plane), jnp.float32),
        ws=ws, bs=bs,
        w3=w3, b3=b3,
    )


def qnet_reference(state, p):
    """Pure-JAX f32 reference mirroring the PyTorch forward (training-mode BN),
    including the b1/b2 biases that the kernel proves are mathematically dead."""
    def bn(x, g, be):
        mu = jnp.mean(x, axis=0, keepdims=True)
        var = jnp.mean((x - mu) ** 2, axis=0, keepdims=True)
        return (x - mu) / jnp.sqrt(var + BN_EPS) * g + be

    x1 = state @ p["w1"] + p["b1"]
    x1 = jnp.maximum(bn(x1, p["g1"], p["be1"]), 0.0)
    x2 = bn(x1 @ p["w2"] + p["b2"], p["g2"], p["be2"])
    x1p = x1 @ p["ws"] + p["bs"]
    x2 = jnp.maximum(x2 + x1p, 0.0)
    return jnp.maximum(x2 @ p["w3"] + p["b3"], 0.0)


if __name__ == "__main__":
    B, D, A = 16, 32, 4                      # batch, input_shape[0], action_size
    key = jax.random.PRNGKey(0)
    k_x, k_p = jax.random.split(key)
    state = jax.random.normal(k_x, (B, D), jnp.float32)
    params = init_params(k_p, D, A)
    packed = pack_params(params, A)

    fwd = jax.jit(qnet_forward, static_argnums=(2, 3))
    out = fwd(state, packed, A, 8)           # tile_b=8 -> 2 tiles: exercises the grid
    out = jax.block_until_ready(out)

    ref = qnet_reference(state, params)
    assert out.shape == (B, A)
    # bf16 MXU operands -> relaxed tolerance vs the f32 reference.
    assert jnp.allclose(out, ref, atol=5e-2, rtol=5e-2), \
        f"mismatch vs reference (max abs err {jnp.max(jnp.abs(out - ref))})"
    print("KERNEL_OK")
</pallas_src>

<mosaic_0001>
module attributes {stable_mosaic.version = 11 : i64} {
  func.func @qnet_kernel(%arg0: i32, %arg1: i32, %arg2: memref<8x32xbf16, #tpu.memory_space<vmem>>, %arg3: memref<32x16xbf16, #tpu.memory_space<vmem>>, %arg4: memref<16x128xbf16, #tpu.memory_space<vmem>>, %arg5: memref<128x4xbf16, #tpu.memory_space<vmem>>, %arg6: memref<8x128xf32, #tpu.memory_space<vmem>>, %arg7: memref<8x4xf32, #tpu.memory_space<vmem>>, %arg8: memref<16x16xf32, #tpu.memory_space<vmem>>, %arg9: memref<16x128xf32, #tpu.memory_space<vmem>>, %arg10: memref<1x32xf32, #tpu.memory_space<vmem>>, %arg11: memref<1x256xf32, #tpu.memory_space<vmem>>, %arg12: memref<1x16xf32, #tpu.memory_space<vmem>>, %arg13: memref<1x128xf32, #tpu.memory_space<vmem>>, %arg14: memref<2x16xf32, #tpu.memory_space<vmem>>, %arg15: memref<2x128xf32, #tpu.memory_space<vmem>>) attributes {dimension_semantics = [#tpu.dimension_semantics<arbitrary>, #tpu.dimension_semantics<arbitrary>], iteration_bounds = array<i64: 3, 2>, scalar_prefetch = 0 : i64, scratch_operands = 8 : i64, tpu.core_type = #tpu.core_type<tc>, window_params = [{transform_indices = @transform_0, window_bounds = array<i64: 8, 32>}, {pipeline_mode = #tpu.pipeline_mode<synchronous>, transform_indices = @transform_1, window_bounds = array<i64: 32, 16>}, {pipeline_mode = #tpu.pipeline_mode<synchronous>, transform_indices = @transform_2, window_bounds = array<i64: 16, 128>}, {pipeline_mode = #tpu.pipeline_mode<synchronous>, transform_indices = @transform_3, window_bounds = array<i64: 128, 4>}, {pipeline_mode = #tpu.pipeline_mode<synchronous>, transform_indices = @transform_4, window_bounds = array<i64: 8, 128>}, {transform_indices = @transform_5, window_bounds = array<i64: 8, 4>}]} {
    %c8_i32 = arith.constant 8 : i32
    %0 = arith.muli %arg1, %c8_i32 : i32
    %1 = tpu.assume_multiple %0, 8 : i32
    %cst = arith.constant 1.000000e+00 : f32
    %2 = vector.broadcast %cst : f32 to vector<1x8xf32>
    %c0_i32 = arith.constant 0 : i32
    %3 = arith.cmpi eq, %arg0, %c0_i32 : i32
    %4 = arith.extui %3 : i1 to i32
    %c0_i32_0 = arith.constant 0 : i32
    %5 = arith.cmpi ne, %4, %c0_i32_0 : i32
    scf.if %5 {
      %c0 = arith.constant 0 : index
      %c0_3 = arith.constant 0 : index
      %12 = vector.load %arg2[%c0, %c0_3] : memref<8x32xbf16, #tpu.memory_space<vmem>>, vector<8x32xbf16>
      %c0_4 = arith.constant 0 : index
      %c0_5 = arith.constant 0 : index
      %13 = vector.load %arg3[%c0_4, %c0_5] : memref<32x16xbf16, #tpu.memory_space<vmem>>, vector<32x16xbf16>
      %cst_6 = arith.constant dense<0.000000e+00> : vector<8x16xf32>
      %14 = tpu.matmul %12, %13, %cst_6 {dimension_numbers = #tpu.dot_dimension_numbers<[1], [0], [0], [1], [0, 0, 1, 1], [], []>} : vector<8x32xbf16>, vector<32x16xbf16>, vector<8x16xf32> -> vector<8x16xf32>
      %15 = arith.index_cast %1 : i32 to index
      %c0_7 = arith.constant 0 : index
      %16 = vector.load %arg8[%15, %c0_7] : memref<16x16xf32, #tpu.memory_space<vmem>>, vector<8x16xf32>
      tpu.vector_store %arg8[%15, %c0_7], %14 {strides = array<i32>} : memref<16x16xf32, #tpu.memory_space<vmem>>, vector<8x16xf32>,
      %c0_i32_8 = arith.constant 0 : i32
      %17 = arith.cmpi eq, %arg1, %c0_i32_8 : i32
      %18 = arith.extui %17 : i1 to i32
      %c0_i32_9 = arith.constant 0 : i32
      %19 = arith.cmpi ne, %18, %c0_i32_9 : i32
      scf.if %19 {
        %cst_17 = arith.constant dense<0.000000e+00> : vector<1x16xf32>
        %29 = tpu.matmul %2, %14, %cst_17 {dimension_numbers = #tpu.dot_dimension_numbers<[1], [0], [0], [1], [0, 0, 1, 1], [], []>} : vector<1x8xf32>, vector<8x16xf32>, vector<1x16xf32> -> vector<1x16xf32>
        %cst_18 = arith.constant 1.250000e-01 : f32
        %30 = vector.broadcast %cst_18 : f32 to vector<1x16xf32>
        %31 = arith.mulf %29, %30 : vector<1x16xf32>
        %c0_19 = arith.constant 0 : index
        %c0_20 = arith.constant 0 : index
        %32 = vector.load %arg12[%c0_19, %c0_20] : memref<1x16xf32, #tpu.memory_space<vmem>>, vector<1x16xf32>
        tpu.vector_store %arg12[%c0_19, %c0_20], %31 {strides = array<i32>} : memref<1x16xf32, #tpu.memory_space<vmem>>, vector<1x16xf32>,
        %cst_21 = arith.constant 0.000000e+00 : f32
        %33 = vector.broadcast %cst_21 : f32 to vector<1x32xf32>
        %c0_22 = arith.constant 0 : index
        %c0_23 = arith.constant 0 : index
        %34 = vector.load %arg10[%c0_22, %c0_23] : memref<1x32xf32, #tpu.memory_space<vmem>>, vector<1x32xf32>
        tpu.vector_store %arg10[%c0_22, %c0_23], %33 {strides = array<i32>} : memref<1x32xf32, #tpu.memory_space<vmem>>, vector<1x32xf32>,
      } else {
      }
      %c0_10 = arith.constant 0 : index
      %c0_11 = arith.constant 0 : index
      %20 = vector.load %arg12[%c0_10, %c0_11] : memref<1x16xf32, #tpu.memory_space<vmem>>, vector<1x16xf32>
      %21 = vector.broadcast %20 : vector<1x16xf32> to vector<8x16xf32>
      %22 = arith.subf %14, %21 : vector<8x16xf32>
      %c0_12 = arith.constant 0 : index
      %c0_13 = arith.constant 0 : index
      %23 = vector.load %arg10[%c0_12, %c0_13] : memref<1x32xf32, #tpu.memory_space<vmem>>, vector<1x32xf32>
      %24 = arith.mulf %22, %22 : vector<8x16xf32>
      %25 = tpu.concatenate %22, %24 in 1 : vector<8x16xf32>, vector<8x16xf32> -> vector<8x32xf32>
      %cst_14 = arith.constant dense<0.000000e+00> : vector<1x32xf32>
      %26 = tpu.matmul %2, %25, %cst_14 {dimension_numbers = #tpu.dot_dimension_numbers<[1], [0], [0], [1], [0, 0, 1, 1], [], []>} : vector<1x8xf32>, vector<8x32xf32>, vector<1x32xf32> -> vector<1x32xf32>
      %27 = arith.addf %23, %26 : vector<1x32xf32>
      %c0_15 = arith.constant 0 : index
      %c0_16 = arith.constant 0 : index
      %28 = vector.load %arg10[%c0_15, %c0_16] : memref<1x32xf32, #tpu.memory_space<vmem>>, vector<1x32xf32>
      tpu.vector_store %arg10[%c0_15, %c0_16], %27 {strides = array<i32>} : memref<1x32xf32, #tpu.memory_space<vmem>>, vector<1x32xf32>,
    } else {
    }
    %c1_i32 = arith.constant 1 : i32
    %6 = arith.cmpi eq, %arg0, %c1_i32 : i32
    %7 = arith.extui %6 : i1 to i32
    %c0_i32_1 = arith.constant 0 : i32
    %8 = arith.cmpi ne, %7, %c0_i32_1 : i32
    scf.if %8 {
      %c0_i32_3 = arith.constant 0 : i32
      %12 = arith.cmpi eq, %arg1, %c0_i32_3 : i32
      %13 = arith.extui %12 : i1 to i32
      %c0_i32_4 = arith.constant 0 : i32
      %14 = arith.cmpi ne, %13, %c0_i32_4 : i32
      scf.if %14 {
        %c0_22 = arith.constant 0 : index
        %c0_23 = arith.constant 0 : index
        %42 = vector.load %arg10[%c0_22, %c0_23] : memref<1x32xf32, #tpu.memory_space<vmem>>, vector<1x32xf32>
        %cst_24 = arith.constant 6.250000e-02 : f32
        %43 = vector.broadcast %cst_24 : f32 to vector<1x32xf32>
        %44 = arith.mulf %42, %43 : vector<1x32xf32>
        %45 = vector.extract_strided_slice %44 {offsets = [0, 0], sizes = [1, 16], strides = [1, 1]} : vector<1x32xf32> to vector<1x16xf32>
        %46 = vector.extract_strided_slice %44 {offsets = [0, 16], sizes = [1, 16], strides = [1, 1]} : vector<1x32xf32> to vector<1x16xf32>
        %47 = arith.mulf %45, %45 : vector<1x16xf32>
        %48 = arith.subf %46, %47 : vector<1x16xf32>
        %cst_25 = arith.constant 0.000000e+00 : f32
        %49 = vector.broadcast %cst_25 : f32 to vector<1x16xf32>
        %50 = arith.maximumf %48, %49 : vector<1x16xf32>
        %c0_26 = arith.constant 0 : index
        %c0_27 = arith.constant 0 : index
        %51 = vector.load %arg12[%c0_26, %c0_27] : memref<1x16xf32, #tpu.memory_space<vmem>>, vector<1x16xf32>
        %52 = arith.addf %51, %45 : vector<1x16xf32>
        %c0_28 = arith.constant 0 : index
        %c0_29 = arith.constant 0 : index
        %53 = vector.load %arg6[%c0_28, %c0_29] : memref<8x128xf32, #tpu.memory_space<vmem>>, vector<1x16xf32>
        %c1_30 = arith.constant 1 : index
        %c0_31 = arith.constant 0 : index
        %54 = vector.load %arg6[%c1_30, %c0_31] : memref<8x128xf32, #tpu.memory_space<vmem>>, vector<1x16xf32>
        %cst_32 = arith.constant 9.99999974E-6 : f32
        %55 = vector.broadcast %cst_32 : f32 to vector<1x16xf32>
        %56 = arith.addf %50, %55 : vector<1x16xf32>
        %57 = math.rsqrt %56 : vector<1x16xf32>
        %58 = arith.mulf %53, %57 : vector<1x16xf32>
        %c0_33 = arith.constant 0 : index
        %c0_34 = arith.constant 0 : index
        %59 = vector.load %arg14[%c0_33, %c0_34] : memref<2x16xf32, #tpu.memory_space<vmem>>, vector<1x16xf32>
        tpu.vector_store %arg14[%c0_33, %c0_34], %58 {strides = array<i32>} : memref<2x16xf32, #tpu.memory_space<vmem>>, vector<1x16xf32>,
        %60 = arith.mulf %52, %58 : vector<1x16xf32>
        %61 = arith.subf %54, %60 : vector<1x16xf32>
        %c1_35 = arith.constant 1 : index
        %c0_36 = arith.constant 0 : index
        %62 = vector.load %arg14[%c1_35, %c0_36] : memref<2x16xf32, #tpu.memory_space<vmem>>, vector<1x16xf32>
        tpu.vector_store %arg14[%c1_35, %c0_36], %61 {strides = array<i32>} : memref<2x16xf32, #tpu.memory_space<vmem>>, vector<1x16xf32>,
      } else {
      }
      %15 = arith.index_cast %1 : i32 to index
      %c0 = arith.constant 0 : index
      %16 = vector.load %arg8[%15, %c0] : memref<16x16xf32, #tpu.memory_space<vmem>>, vector<8x16xf32>
      %c0_5 = arith.constant 0 : index
      %c0_6 = arith.constant 0 : index
      %17 = vector.load %arg14[%c0_5, %c0_6] : memref<2x16xf32, #tpu.memory_space<vmem>>, vector<1x16xf32>
      %18 = vector.broadcast %17 : vector<1x16xf32> to vector<8x16xf32>
      %19 = arith.mulf %16, %18 : vector<8x16xf32>
      %c1 = arith.constant 1 : index
      %c0_7 = arith.constant 0 : index
      %20 = vector.load %arg14[%c1, %c0_7] : memref<2x16xf32, #tpu.memory_space<vmem>>, vector<1x16xf32>
      %21 = vector.broadcast %20 : vector<1x16xf32> to vector<8x16xf32>
      %22 = arith.addf %19, %21 : vector<8x16xf32>
      %cst_8 = arith.constant 0.000000e+00 : f32
      %23 = vector.broadcast %cst_8 : f32 to vector<8x16xf32>
      %24 = arith.maximumf %22, %23 : vector<8x16xf32>
      %25 = arith.truncf %24 : vector<8x16xf32> to vector<8x16xbf16>
      %c0_9 = arith.constant 0 : index
      %c0_10 = arith.constant 0 : index
      %26 = vector.load %arg4[%c0_9, %c0_10] : memref<16x128xbf16, #tpu.memory_space<vmem>>, vector<16x128xbf16>
      %cst_11 = arith.constant dense<0.000000e+00> : vector<8x128xf32>
      %27 = tpu.matmul %25, %26, %cst_11 {dimension_numbers = #tpu.dot_dimension_numbers<[1], [0], [0], [1], [0, 0, 1, 1], [], []>} : vector<8x16xbf16>, vector<16x128xbf16>, vector<8x128xf32> -> vector<8x128xf32>
      %28 = arith.index_cast %1 : i32 to index
      %c0_12 = arith.constant 0 : index
      %29 = vector.load %arg9[%28, %c0_12] : memref<16x128xf32, #tpu.memory_space<vmem>>, vector<8x128xf32>
      tpu.vector_store %arg9[%28, %c0_12], %27 {strides = array<i32>} : memref<16x128xf32, #tpu.memory_space<vmem>>, vector<8x128xf32>,
      %c0_i32_13 = arith.constant 0 : i32
      %30 = arith.cmpi eq, %arg1, %c0_i32_13 : i32
      %31 = arith.extui %30 : i1 to i32
      %c0_i32_14 = arith.constant 0 : i32
      %32 = arith.cmpi ne, %31, %c0_i32_14 : i32
      scf.if %32 {
        %cst_22 = arith.constant dense<0.000000e+00> : vector<1x128xf32>
        %42 = tpu.matmul %2, %27, %cst_22 {dimension_numbers = #tpu.dot_dimension_numbers<[1], [0], [0], [1], [0, 0, 1, 1], [], []>} : vector<1x8xf32>, vector<8x128xf32>, vector<1x128xf32> -> vector<1x128xf32>
        %cst_23 = arith.constant 1.250000e-01 : f32
        %43 = vector.broadcast %cst_23 : f32 to vector<1x128xf32>
        %44 = arith.mulf %42, %43 : vector<1x128xf32>
        %c0_24 = arith.constant 0 : index
        %c0_25 = arith.constant 0 : index
        %45 = vector.load %arg13[%c0_24, %c0_25] : memref<1x128xf32, #tpu.memory_space<vmem>>, vector<1x128xf32>
        tpu.vector_store %arg13[%c0_24, %c0_25], %44 {strides = array<i32>} : memref<1x128xf32, #tpu.memory_space<vmem>>, vector<1x128xf32>,
        %cst_26 = arith.constant 0.000000e+00 : f32
        %46 = vector.broadcast %cst_26 : f32 to vector<1x256xf32>
        %c0_27 = arith.constant 0 : index
        %c0_28 = arith.constant 0 : index
        %47 = vector.load %arg11[%c0_27, %c0_28] : memref<1x256xf32, #tpu.memory_space<vmem>>, vector<1x256xf32>
        tpu.vector_store %arg11[%c0_27, %c0_28], %46 {strides = array<i32>} : memref<1x256xf32, #tpu.memory_space<vmem>>, vector<1x256xf32>,
      } else {
      }
      %c0_15 = arith.constant 0 : index
      %c0_16 = arith.constant 0 : index
      %33 = vector.load %arg13[%c0_15, %c0_16] : memref<1x128xf32, #tpu.memory_space<vmem>>, vector<1x128xf32>
      %34 = vector.broadcast %33 : vector<1x128xf32> to vector<8x128xf32>
      %35 = arith.subf %27, %34 : vector<8x128xf32>
      %c0_17 = arith.constant 0 : index
      %c0_18 = arith.constant 0 : index
      %36 = vector.load %arg11[%c0_17, %c0_18] : memref<1x256xf32, #tpu.memory_space<vmem>>, vector<1x256xf32>
      %37 = arith.mulf %35, %35 : vector<8x128xf32>
      %38 = tpu.concatenate %35, %37 in 1 : vector<8x128xf32>, vector<8x128xf32> -> vector<8x256xf32>
      %cst_19 = arith.constant dense<0.000000e+00> : vector<1x256xf32>
      %39 = tpu.matmul %2, %38, %cst_19 {dimension_numbers = #tpu.dot_dimension_numbers<[1], [0], [0], [1], [0, 0, 1, 1], [], []>} : vector<1x8xf32>, vector<8x256xf32>, vector<1x256xf32> -> vector<1x256xf32>
      %40 = arith.addf %36, %39 : vector<1x256xf32>
      %c0_20 = arith.constant 0 : index
      %c0_21 = arith.constant 0 : index
      %41 = vector.load %arg11[%c0_20, %c0_21] : memref<1x256xf32, #tpu.memory_space<vmem>>, vector<1x256xf32>
      tpu.vector_store %arg11[%c0_20, %c0_21], %40 {strides = array<i32>} : memref<1x256xf32, #tpu.memory_space<vmem>>, vector<1x256xf32>,
    } else {
    }
    %c2_i32 = arith.constant 2 : i32
    %9 = arith.cmpi eq, %arg0, %c2_i32 : i32
    %10 = arith.extui %9 : i1 to i32
    %c0_i32_2 = arith.constant 0 : i32
    %11 = arith.cmpi ne, %10, %c0_i32_2 : i32
    scf.if %11 {
      %c0_i32_3 = arith.constant 0 : i32
      %12 = arith.cmpi eq, %arg1, %c0_i32_3 : i32
      %13 = arith.extui %12 : i1 to i32
      %c0_i32_4 = arith.constant 0 : i32
      %14 = arith.cmpi ne, %13, %c0_i32_4 : i32
      scf.if %14 {
        %c0_16 = arith.constant 0 : index
        %c0_17 = arith.constant 0 : index
        %36 = vector.load %arg11[%c0_16, %c0_17] : memref<1x256xf32, #tpu.memory_space<vmem>>, vector<1x256xf32>
        %cst_18 = arith.constant 6.250000e-02 : f32
        %37 = vector.broadcast %cst_18 : f32 to vector<1x256xf32>
        %38 = arith.mulf %36, %37 : vector<1x256xf32>
        %39 = vector.extract_strided_slice %38 {offsets = [0, 0], sizes = [1, 128], strides = [1, 1]} : vector<1x256xf32> to vector<1x128xf32>
        %40 = vector.extract_strided_slice %38 {offsets = [0, 128], sizes = [1, 128], strides = [1, 1]} : vector<1x256xf32> to vector<1x128xf32>
        %41 = arith.mulf %39, %39 : vector<1x128xf32>
        %42 = arith.subf %40, %41 : vector<1x128xf32>
        %cst_19 = arith.constant 0.000000e+00 : f32
        %43 = vector.broadcast %cst_19 : f32 to vector<1x128xf32>
        %44 = arith.maximumf %42, %43 : vector<1x128xf32>
        %c0_20 = arith.constant 0 : index
        %c0_21 = arith.constant 0 : index
        %45 = vector.load %arg13[%c0_20, %c0_21] : memref<1x128xf32, #tpu.memory_space<vmem>>, vector<1x128xf32>
        %46 = arith.addf %45, %39 : vector<1x128xf32>
        %c2 = arith.constant 2 : index
        %c0_22 = arith.constant 0 : index
        %47 = vector.load %arg6[%c2, %c0_22] : memref<8x128xf32, #tpu.memory_space<vmem>>, vector<1x128xf32>
        %c3 = arith.constant 3 : index
        %c0_23 = arith.constant 0 : index
        %48 = vector.load %arg6[%c3, %c0_23] : memref<8x128xf32, #tpu.memory_space<vmem>>, vector<1x128xf32>
        %c4 = arith.constant 4 : index
        %c0_24 = arith.constant 0 : index
        %49 = vector.load %arg6[%c4, %c0_24] : memref<8x128xf32, #tpu.memory_space<vmem>>, vector<1x128xf32>
        %50 = tpu.iota {dimensions = array<i32: 1>} : vector<1x128xi32>
        %c64_i32_25 = arith.constant 64 : i32
        %51 = vector.broadcast %c64_i32_25 : i32 to vector<1x128xi32>
        %52 = arith.cmpi slt, %50, %51 : vector<1x128xi32>
        %cst_26 = arith.constant 9.99999974E-6 : f32
        %53 = vector.broadcast %cst_26 : f32 to vector<1x128xf32>
        %54 = arith.addf %44, %53 : vector<1x128xf32>
        %55 = math.rsqrt %54 : vector<1x128xf32>
        %56 = arith.mulf %47, %55 : vector<1x128xf32>
        %cst_27 = arith.constant 1.000000e+00 : f32
        %57 = vector.broadcast %cst_27 : f32 to vector<1x128xf32>
        %58 = arith.select %52, %56, %57 : vector<1x128xi1>, vector<1x128xf32>
        %59 = arith.mulf %46, %58 : vector<1x128xf32>
        %60 = arith.subf %48, %59 : vector<1x128xf32>
        %61 = arith.addf %60, %49 : vector<1x128xf32>
        %cst_28 = arith.constant 0.000000e+00 : f32
        %62 = vector.broadcast %cst_28 : f32 to vector<1x128xf32>
        %63 = arith.select %52, %61, %62 : vector<1x128xi1>, vector<1x128xf32>
        %c0_29 = arith.constant 0 : index
        %c0_30 = arith.constant 0 : index
        %64 = vector.load %arg15[%c0_29, %c0_30] : memref<2x128xf32, #tpu.memory_space<vmem>>, vector<1x128xf32>
        tpu.vector_store %arg15[%c0_29, %c0_30], %58 {strides = array<i32>} : memref<2x128xf32, #tpu.memory_space<vmem>>, vector<1x128xf32>,
        %c1_31 = arith.constant 1 : index
        %c0_32 = arith.constant 0 : index
        %65 = vector.load %arg15[%c1_31, %c0_32] : memref<2x128xf32, #tpu.memory_space<vmem>>, vector<1x128xf32>
        tpu.vector_store %arg15[%c1_31, %c0_32], %63 {strides = array<i32>} : memref<2x128xf32, #tpu.memory_space<vmem>>, vector<1x128xf32>,
      } else {
      }
      %15 = arith.index_cast %1 : i32 to index
      %c0 = arith.constant 0 : index
      %16 = vector.load %arg9[%15, %c0] : memref<16x128xf32, #tpu.memory_space<vmem>>, vector<8x128xf32>
      %c0_5 = arith.constant 0 : index
      %c0_6 = arith.constant 0 : index
      %17 = vector.load %arg15[%c0_5, %c0_6] : memref<2x128xf32, #tpu.memory_space<vmem>>, vector<1x128xf32>
      %18 = vector.broadcast %17 : vector<1x128xf32> to vector<8x128xf32>
      %19 = arith.mulf %16, %18 : vector<8x128xf32>
      %c64_i32 = arith.constant 64 : i32
      %20 = tpu.dynamic_rotate %19 by %c64_i32 dim 1 : vector<8x128xf32>, i32 -> vector<8x128xf32>
      %21 = arith.addf %19, %20 : vector<8x128xf32>
      %c1 = arith.constant 1 : index
      %c0_7 = arith.constant 0 : index
      %22 = vector.load %arg15[%c1, %c0_7] : memref<2x128xf32, #tpu.memory_space<vmem>>, vector<1x128xf32>
      %23 = vector.broadcast %22 : vector<1x128xf32> to vector<8x128xf32>
      %24 = arith.addf %21, %23 : vector<8x128xf32>
      %cst_8 = arith.constant 0.000000e+00 : f32
      %25 = vector.broadcast %cst_8 : f32 to vector<8x128xf32>
      %26 = arith.maximumf %24, %25 : vector<8x128xf32>
      %c5 = arith.constant 5 : index
      %c0_9 = arith.constant 0 : index
      %27 = vector.load %arg6[%c5, %c0_9] : memref<8x128xf32, #tpu.memory_space<vmem>>, vector<1x4xf32>
      %28 = arith.truncf %26 : vector<8x128xf32> to vector<8x128xbf16>
      %c0_10 = arith.constant 0 : index
      %c0_11 = arith.constant 0 : index
      %29 = vector.load %arg5[%c0_10, %c0_11] : memref<128x4xbf16, #tpu.memory_space<vmem>>, vector<128x4xbf16>
      %cst_12 = arith.constant dense<0.000000e+00> : vector<8x4xf32>
      %30 = tpu.matmul %28, %29, %cst_12 {dimension_numbers = #tpu.dot_dimension_numbers<[1], [0], [0], [1], [0, 0, 1, 1], [], []>} : vector<8x128xbf16>, vector<128x4xbf16>, vector<8x4xf32> -> vector<8x4xf32>
      %31 = vector.broadcast %27 : vector<1x4xf32> to vector<8x4xf32>
      %32 = arith.addf %30, %31 : vector<8x4xf32>
      %cst_13 = arith.constant 0.000000e+00 : f32
      %33 = vector.broadcast %cst_13 : f32 to vector<8x4xf32>
      %34 = arith.maximumf %32, %33 : vector<8x4xf32>
      %c0_14 = arith.constant 0 : index
      %c0_15 = arith.constant 0 : index
      %35 = vector.load %arg7[%c0_14, %c0_15] : memref<8x4xf32, #tpu.memory_space<vmem>>, vector<8x4xf32>
      tpu.vector_store %arg7[%c0_14, %c0_15], %34 {strides = array<i32>} : memref<8x4xf32, #tpu.memory_space<vmem>>, vector<8x4xf32>,
    } else {
    }
    return
  }
  func.func @transform_0(%arg0: i32, %arg1: i32) -> (i32, i32) {
    %c0_i32 = arith.constant 0 : i32
    %0 = arith.cmpi eq, %arg0, %c0_i32 : i32
    %c0_i32_0 = arith.constant 0 : i32
    %1 = arith.select %0, %arg1, %c0_i32_0 : i32
    %c0_i32_1 = arith.constant 0 : i32
    %c0_i32_2 = arith.constant 0 : i32
    return %1, %c0_i32_1 : i32, i32
  }
  func.func @transform_1(%arg0: i32, %arg1: i32) -> (i32, i32) {
    %c0_i32 = arith.constant 0 : i32
    %c0_i32_0 = arith.constant 0 : i32
    %c0_i32_1 = arith.constant 0 : i32
    return %c0_i32, %c0_i32_0 : i32, i32
  }
  func.func @transform_2(%arg0: i32, %arg1: i32) -> (i32, i32) {
    %c0_i32 = arith.constant 0 : i32
    %c0_i32_0 = arith.constant 0 : i32
    %c0_i32_1 = arith.constant 0 : i32
    return %c0_i32, %c0_i32_0 : i32, i32
  }
  func.func @transform_3(%arg0: i32, %arg1: i32) -> (i32, i32) {
    %c0_i32 = arith.constant 0 : i32
    %c0_i32_0 = arith.constant 0 : i32
    %c0_i32_1 = arith.constant 0 : i32
    return %c0_i32, %c0_i32_0 : i32, i32
  }
  func.func @transform_4(%arg0: i32, %arg1: i32) -> (i32, i32) {
    %c0_i32 = arith.constant 0 : i32
    %c0_i32_0 = arith.constant 0 : i32
    %c0_i32_1 = arith.constant 0 : i32
    return %c0_i32, %c0_i32_0 : i32, i32
  }
  func.func @transform_5(%arg0: i32, %arg1: i32) -> (i32, i32) {
    %c2_i32 = arith.constant 2 : i32
    %0 = arith.cmpi eq, %arg0, %c2_i32 : i32
    %c0_i32 = arith.constant 0 : i32
    %1 = arith.select %0, %arg1, %c0_i32 : i32
    %c0_i32_0 = arith.constant 0 : i32
    %c0_i32_1 = arith.constant 0 : i32
    return %1, %c0_i32_0 : i32, i32
  }
}

</mosaic_0001>

<bundles_post_ra>
// kernel: qnet_forward.1
= control target key start
LH: loop header
LB: loop body
LE: loop exit
PB: predicated region body
PF: predicated region fallthrough
CT: control target
= control target key end

     0   :  { %s1318_s18 = smov 0   ;;  %s1320_s19 = smov 0   ;;  %s1452_s0 = inlined_call_operand.vmem [shape: bf16[16,32], index: 0, kind: input, shape index: {}]   ;;  %s1453_s1 = inlined_call_operand.vmem [shape: bf16[32,16], index: 1, kind: input, shape index: {}]   ;;  %s1454_s2 = inlined_call_operand.vmem [shape: bf16[16,128], index: 2, kind: input, shape index: {}]   ;;  %s1455_s3 = inlined_call_operand.vmem [shape: bf16[128,4], index: 3, kind: input, shape index: {}]   ;;  %s1456_s4 = inlined_call_operand.vmem [shape: f32[8,128], index: 4, kind: input, shape index: {}]   ;;  %s1457_s5 = inlined_call_operand.vmem [shape: f32[16,4], index: 5, kind: output, shape index: {}]  }
   0x1   :  { %s1322_s20 = smov 0   ;;  %s1324_s21 = smov 0  }
   0x2   :  { %s1326_s22 = smov 0  }
   0x3 LB: > { %s24_s23 = sadd.s32 1, %s1259_s20  ;;  %s27_s24 = sadd.s32 1, %s1263_s21  ;;  %s1267_s22 = sphi %s1326_s22, %s15_s22   ;;  %s1263_s21 = sphi %s1324_s21, %s1461_s21   ;;  %s1259_s20 = sphi %s1322_s20, %s1460_s20   ;;  %s1255_s19 = sphi %s1320_s19, %s1459_s19   ;;  %s1251_s18 = sphi %s1318_s18, %s1458_s18  }
   0x4   : > { %p25_p0 = scmp.ge.s32.totalorder %s24_s23, 2  ;;  %p1049_p1 = scmp.ge.s32.totalorder %s1267_s22, 1 }
   0x5   : > { %p210_p2 = scmp.lt.s32.totalorder %s1267_s22, 7 }
   0x6   : > { %s1463_s23 = smov (%p25_p0, %s24_s23), 0  ;;  %s1465_s24 = smov (!%p25_p0, %s27_s24), %s1263_s21 }
   0x7   : > { %p211_p3 = pnand %p1049_p1, %p210_p2  ;;  %p29_p4 = scmp.ge.s32.totalorder %s1465_s24, 3 }
   0x8   : > { %p240_p5 = scmp.eq.s32.totalorder (!%p211_p3), %s1255_s19, 0  ;;  %p248_p6 = scmp.eq.s32.totalorder (!%p211_p3), %s1255_s19, 2 }
   0x9   : > { %s1467_s24 = smov (%p29_p4, %s1465_s24), 0  ;;  %214 = sbr.rel (%p211_p3) target bundleno = 2031 (0x7ef), region = 40 }
   0xa   : > { %s1355_s25 = sshll.u32 (!%p211_p3), %s1251_s18, 3  ;;  %p1053_p9 = scmp.ne.s32.totalorder (!%p211_p3), %s1255_s19, 0 }
   0xe   : > { %s241_s26 = scalar_select %p240_p5, %s1251_s18, 0 }
   0xf   : > { %s249_s27 = scalar_select %p248_p6, %s1251_s18, 0 }
  0x10   : > { %p242_p7 = scmp.lt.s32.totalorder %s241_s26, 1  ;;  %s323_s15 = scalar_lea.vmem (!%p1053_p9), [#allocation2], %s1355_s25 }
  0x11   : > { %p250_p8 = scmp.lt.s32.totalorder %s249_s27, 1  ;;  %261 = sbr.rel (%p1053_p9) target bundleno = 753 (0x2f1), region = 44 }
  0x12   : > { %s1469_s26 = smov (!%p242_p7, %s241_s26), 1  ;;  %p1057_p10 = scmp.ne.s32.totalorder (!%p1053_p9), %s1251_s18, 0 }
  0x13   : > { %s1471_s27 = smov (!%p250_p8, %s249_s27), 1  ;;  %s1050_s28 = sshll.u32 %s1469_s26, 2 }
  0x14   : > { %s245_s6 = scalar_lea.vmem %s1452_s0, %s1050_s28  ;;  %s1051_s7 = sshll.u32 %s1471_s27, 3 }
  0x15   : > { %s1365_s10 = scalar_lea.vmem %s1457_s5, %s1051_s7 }
  0x16   : > { %v1214_v0 = vld [vmem:[%s1453_s1 + $0x8] sm:$0xff]   ;;  %v1269_v1 = vmov 0.0   ;;  %v1215_v2 = vld [vmem:[%s1453_s1] sm:$0xff]   ;;  %vm1270_vm0 = vmmov 0   ;;  %vm279_vm1 = vcmask 261120   ;;  %vm324_vm2 = vcmask 130048  }
  0x17   : > { %1106 = vmatprep.subr.bf16.mxu0 %v1269_v1  ;;  %1110 = vmatprep.mubr.msk.bf16.mxu0 %vm1270_vm0, %v1269_v1  ;;  %v262_v3 = vld [vmem:[%s245_s6] sm:$0xf] }
  0x18   : > { %1107 = vmatpush3.bf16.msra.mxu0 %v1214_v0 }
  0x19   : > { %1108 = vmatprep.subr.bf16.mxu0 %v1269_v1 }
  0x1c   : > { %1109 = vmatpush3.bf16.msra.mxu0 %v1215_v2 }
  0x1f   : > { %1111 = vmatmul.mubr.msk.bf16.vlgmr.msra.gmra.mxu0 %vm279_vm1, %v262_v3 }
  0xdf   : > { %v317_v4 = vpop.f32.mrf.mxu0 }
  0xe0   : > { %325 = vst.msk [vmem:[%s323_s15] sm:$0xff] %vm324_vm2, %v317_v4 }
  0xe1   : > { %v1112_v5 = vpop.f32.mrf.mxu0  ;;  %329 = sbr.rel (%p1057_p10) target bundleno = 429 (0x1ad), region = 48 }
  0xe3   : > { %v320_v6 = vpop.f32.mrf.mxu0 }
  0xe5   : > { %v1113_v7 = vpop.f32.mrf.mxu0 }
  0xe6   : > { %vm407_vm3 = vcmask 253952   ;;  %vm330_vm4 = vcmask 64512   ;;  %v1271_v8 = vmov 0.0   ;;  %vm1272_vm5 = vmmov 0  }
  0xe7   : > { %1114 = vmatprep.subr.mxu0 %v1271_v8  ;;  %408 = vst.msk [vmem:[#allocation4] sm:$0x1] %vm407_vm3, %v1271_v8  ;;  %1116 = vmatprep.mubr.msk.f32.mxu0 %vm1272_vm5, %v1271_v8  ;;  %v1273_v9 = vmov 1.0   ;;  %vm405_vm6 = vcmask 122880  }
  0xe8   : > { %1115 = vmatpush3.msra.mxu0 %v317_v4 }
  0xe9   : > { %1117 = vmatmul.mubr.msk.f32.vlgmr.msra.gmra.mxu0 %vm330_vm4, %v1273_v9 }
 0x1a9   : > { %v400_v10 = vpop.f32.mrf.mxu0 }
 0x1aa   : > { %v404_v11 = vmul.f32 0.125, %v400_v10 }
 0x1ab   : > { %v1118_v12 = vpop.f32.mrf.mxu0 }
 0x1ac   : > { %406 = vst.msk [vmem:[#allocation6] sm:$0x1] %vm405_vm6, %v404_v11 }
 0x1ad PF: > { %1119 = vmatprep.subr.mxu0 %v1269_v1  ;;  %1121 = vmatprep.mubr.msk.f32.mxu0 %vm1270_vm0, %v1269_v1  ;;  %s1274_s16 = smov 16   ;;  %vm424_vm7 = vcmask 64512   ;;  %v1275_v18 = vmov 1.0   ;;  %v417_v19 = vld [vmem:[#allocation4] sm:$0x1]  ;;  %vm499_vm8 = vcmask 253952  }
 0x1b3   : > { %v1059_v13 = vld [vmem:[#allocation6] ss:$0 sm:$0xff] }
 0x1b4   : > { %v416_v14 = vsub.f32 %v317_v4, %v1059_v13 }
 0x1b6   : > { %v418_v15 = vmul.f32 %v416_v14, %v416_v14 }
 0x1b8   : > { %420 = vrot.lane.b32.xlu0 %v418_v15, %s1274_s16 }
 0x22a   : > { %v421_v16 = vpop.permute.xlu0 %420 }
 0x22b   : > { %v423_v17 = vsel %vm324_vm2, %v416_v14, %v421_v16 }
 0x22c   : > { %1120 = vmatpush3.msra.mxu0 %v423_v17 }
 0x22d   : > { %1122 = vmatmul.mubr.msk.f32.vlgmr.msra.gmra.mxu0 %vm424_vm7, %v1275_v18 }
 0x2ed   : > { %v494_v20 = vpop.f32.mrf.mxu0 }
 0x2ee   : > { %v498_v21 = vadd.f32 %v494_v20, %v417_v19 }
 0x2ef   : > { %v1123_v22 = vpop.f32.mrf.mxu0 }
 0x2f0   : > { %500 = vst.msk [vmem:[#allocation4] sm:$0x1] %vm499_vm8, %v498_v21 }
 0x2f1 PF: > { %p1061_p11 = scmp.ne.s32.totalorder %s1255_s19, 1 }
 0x2f2   : > { %p1062_p12 = scmp.ne.s32.totalorder (!%p1061_p11), %s1251_s18, 0 }
 0x2f3   : > { %504 = sbr.rel (%p1061_p11) target bundleno = 1657 (0x679), region = 52 }
 0x2f8   : > { %508 = sbr.rel (%p1062_p12) target bundleno = 1029 (0x405), region = 56  ;;  %s1276_s17 = smov (!%p1062_p12), 16  }
 0x2f9   : > { %s1277_s26 = smov (!%p1062_p12), 112  }
 0x2fd   : > { %v509_v23 = vld [vmem:[#allocation4] sm:$0x1]  ;;  %v525_v30 = vlaneseq  ;;  %v518_v35 = vld [vmem:[#allocation6] sm:$0x1]  ;;  %vm533_vm9 = vcmask 122880  }
 0x2fe   : > { %v510_v24 = vmul.f32 0.0625, %v509_v23  ;;  %v520_v36 = vld [vmem:[%s1456_s4] sm:$0x1]  ;;  %v521_v40 = vld [vmem:[%s1456_s4 + $0x1] sm:$0x1] }
 0x2ff   : > { %v526_v31 = vshrl.u32 %v525_v30, 7 }
 0x300   : > { %v511_v25 = vmul.f32 %v510_v24, %v510_v24  ;;  %v519_v37 = vadd.f32 %v518_v35, %v510_v24 }
 0x301   : > { %v527_v32 = vsub.s32 0, %v526_v31 }
 0x302   : > { %513 = vrot.lane.b32.xlu0 %v511_v25, %s1276_s17 }
 0x374   : > { %v514_v26 = vpop.permute.xlu0 %513 }
 0x375   : > { %v516_v27 = vsub.f32 %v510_v24, %v514_v26 }
 0x377   : > { %v517_v28 = vmax.f32 %v516_v27, 0.0 }
 0x379   : > { %v522_v29 = vadd.f32 1e-05, %v517_v28 }
 0x37b   : > { %1216 = vrsqrt.f32 %v522_v29 }
 0x388   : > { %v1217_v33 = vpop.eup %1216 }
 0x389   : > { %v528_v34 = vrot.slane %v1217_v33, %v527_v32 }
 0x38b   : > { %529 = vrot.lane.b32.xlu0 %v528_v34, %s1277_s26 }
 0x3fd   : > { %v530_v38 = vpop.permute.xlu0 %529 }
 0x3fe   : > { %v532_v39 = vmul.f32 %v530_v38, %v520_v36 }
 0x400   : > { %534 = vst.msk [vmem:[#allocation8] sm:$0x1] %vm533_vm9, %v532_v39  ;;  %v535_v41 = vmul.f32 %v532_v39, %v519_v37 }
 0x402   : > { %v536_v42 = vsub.f32 %v521_v40, %v535_v41 }
 0x404   : > { %537 = vst.msk [vmem:[#allocation8 + $0x1] sm:$0x1] %vm533_vm9, %v536_v42 }
 0x405 PF: > { %v1218_v43 = vld [vmem:[%s1454_s2] sm:$0xff]   ;;  %v1278_v44 = vmov 0.0   ;;  %vm1279_vm10 = vmmov 0   ;;  %s538_s8 = scalar_lea.vmem [#allocation2], %s1355_s25  ;;  %vm562_vm11 = vcmask 130048   ;;  %s606_s9 = scalar_lea.vmem [#allocation3], %s1355_s25 }
 0x406   : > { %1124 = vmatprep.subr.bf16.mxu0 %v1278_v44  ;;  %1126 = vmatprep.mubr.msk.bf16.mxu0 %vm1279_vm10, %v1278_v44  ;;  %v539_v46 = vld [vmem:[%s538_s8] sm:$0xff] }
 0x407   : > { %v1063_v45 = vld [vmem:[#allocation8] ss:$0 sm:$0xff]  ;;  %1125 = vmatpush3.bf16.msra.mxu0 %v1218_v43 }
 0x408   : > { %v545_v48 = vmul.f32 %v1063_v45, %v539_v46 }
 0x40b   : > { %v1064_v47 = vld [vmem:[#allocation8 + $0x1] ss:$0 sm:$0xff] }
 0x40c   : > { %v551_v49 = vadd.f32 %v1064_v47, %v545_v48 }
 0x40e   : > { %v552_v50 = vmax.f32 %v551_v49, 0.0 }
 0x410   : > { %v553_v51 = vpack.c.bf16 %v552_v50, %v552_v50 }
 0x412   : > { %1127 = vmatmul.mubr.msk.bf16.vlgmr.msra.gmra.mxu0 %vm562_vm11, %v553_v51 }
 0x4d2   : > { %v600_v52 = vpop.f32.mrf.mxu0 }
 0x4d3   : > { %607 = vst [vmem:[%s606_s9] sm:$0xff] %v600_v52 }
 0x4d4   : > { %v1128_v53 = vpop.f32.mrf.mxu0  ;;  %610 = sbr.rel (%p1062_p12) target bundleno = 1440 (0x5a0), region = 60 }
 0x4d6   : > { %v603_v54 = vpop.f32.mrf.mxu0 }
 0x4d8   : > { %v1129_v55 = vpop.f32.mrf.mxu0 }
 0x4d9   : > { %v687_v56 = vlaneseq  ;;  %vm611_vm12 = vcmask 64512   ;;  %v1280_v57 = vmov 0.0   ;;  %vm1281_vm13 = vmmov 0  }
 0x4da   : > { %1130 = vmatprep.subr.mxu0 %v1280_v57  ;;  %1132 = vmatprep.mubr.msk.f32.mxu0 %vm1281_vm13, %v1280_v57  ;;  %v1282_v58 = vmov 1.0  }
 0x4db   : > { %vm689_vm14 = vcmp.lt.s32.totalorder %v687_v56, 256  ;;  %1131 = vmatpush3.msra.mxu0 %v600_v52 }
 0x4dc   : > { %691 = vst.msk [vmem:[#allocation5] sm:$0x3] %vm689_vm14, %v1280_v57  ;;  %1133 = vmatmul.mubr.msk.f32.vlgmr.msra.gmra.mxu0 %vm611_vm12, %v1282_v58 }
 0x59c   : > { %v681_v59 = vpop.f32.mrf.mxu0 }
 0x59d   : > { %v685_v60 = vmul.f32 0.125, %v681_v59 }
 0x59e   : > { %v1134_v61 = vpop.f32.mrf.mxu0 }
 0x59f   : > { %686 = vst [vmem:[#allocation7] sm:$0x1] %v685_v60 }
 0x5a0 PF: > { %770 = vmatprep.mubr.f32.mxu0 %v1278_v44  ;;  %vm702_vm15 = vcmask 64512   ;;  %v1283_v1 = vmov 1.0   ;;  %v1284_v2 = vmov 1966171168   ;;  %v783_v4 = vlaneseq  ;;  %v700_v12 = vld [vmem:[#allocation5] sm:$0x3] }
 0x5a1   : > { %v781_v3 = vunpack.c.l.s4 %v1284_v2 }
 0x5a2   : > { %v784_v6 = vshrl.u32 %v783_v4, 7  ;;  %vm798_vm0 = vcmp.lt.s32.totalorder %v783_v4, 256 }
 0x5a3   : > { %v782_v5 = vunpack.c.0.s8 %v781_v3 }
 0x5a5   : > { %v785_v8 = vsub.s32 %v782_v5, %v784_v6 }
 0x5a6   : > { %v1069_v62 = vld [vmem:[#allocation7] ss:$0 sm:$0xff] }
 0x5a7   : > { %v699_v63 = vsub.f32 %v600_v52, %v1069_v62 }
 0x5a9   : > { %v701_v0 = vmul.f32 %v699_v63, %v699_v63 }
 0x5ab   : > { %736 = vmatprep.subr.mxu0 %v701_v0 }
 0x5ac   : > { %737 = vmatpush1.msra.mxu0 %v699_v63 }
 0x5ad   : > { %1070 = vmatmul.mubr.msk.f32.vlgmr.msra.gmra.mxu0 %vm702_vm15, %v1283_v1 }
 0x66d   : > { %v772_v7 = vpop.f32.mrf.mxu0 }
 0x66f   : > { %v774_v9 = vpop.f32.mrf.mxu0 }
 0x670   : > { %v779_v10 = vcombine.low %v772_v7, %v774_v9 }
 0x672   : > { %v786_v11 = vrot.slane %v779_v10, %v785_v8 }
 0x674   : > { %v793_v13 = vrot.slane %v786_v11, %v785_v8 }
 0x676   : > { %v795_v14 = vadd.f32 %v793_v13, %v700_v12 }
 0x678   : > { %800 = vst.msk [vmem:[#allocation5] sm:$0x3] %vm798_vm0, %v795_v14 }
 0x679 PF: > { %p1071_p13 = scmp.ne.s32.totalorder %s1255_s19, 2 }
 0x67a   : > { %p1072_p0 = scmp.ne.s32.totalorder (!%p1071_p13), %s1251_s18, 0 }
 0x67b   : > { %804 = sbr.rel (%p1071_p13) target bundleno = 2031 (0x7ef), region = 64 }
 0x680   : > { %808 = sbr.rel (%p1072_p0) target bundleno = 1705 (0x6a9), region = 68 }
 0x685   : > { %v809_v15 = vld [vmem:[#allocation5] sm:$0x3]  ;;  %v822_v22 = vlaneseq  ;;  %v817_v24 = vld [vmem:[#allocation7] sm:$0x1]  ;;  %v820_v29 = vld [vmem:[%s1456_s4 + $0x3] sm:$0x1] }
 0x686   : > { %v810_v16 = vmul.f32 0.0625, %v809_v15  ;;  %v819_v25 = vld [vmem:[%s1456_s4 + $0x2] sm:$0x1]  ;;  %v821_v32 = vld [vmem:[%s1456_s4 + $0x4] sm:$0x1] }
 0x687   : > { %v823_v23 = vand.u32 127, %v822_v22 }
 0x688   : > { %v811_v17 = vmul.f32 %v810_v16, %v810_v16  ;;  %v813_v18 = vrot.slane %v810_v16, 1  ;;  %v818_v27 = vadd.f32 %v817_v24, %v810_v16 }
 0x689   : > { %vm824_vm1 = vcmp.lt.s32.totalorder %v823_v23, 64 }
 0x68a   : > { %v815_v19 = vsub.f32 %v813_v18, %v811_v17 }
 0x68c   : > { %v816_v20 = vmax.f32 %v815_v19, 0.0 }
 0x68e   : > { %v825_v21 = vadd.f32 1e-05, %v816_v20 }
 0x690   : > { %1219 = vrsqrt.f32 %v825_v21 }
 0x69d   : > { %v1220_v26 = vpop.eup %1219 }
 0x69e   : > { %v827_v28 = vmul.f32 %v1220_v26, %v819_v25 }
 0x6a0   : > { %v828_v30 = vsel %vm824_vm1, %v827_v28, 1.0 }
 0x6a1   : > { %v829_v31 = vmul.f32 %v828_v30, %v818_v27  ;;  %833 = vst [vmem:[#allocation9] sm:$0x1] %v828_v30 }
 0x6a3   : > { %v830_v33 = vsub.f32 %v820_v29, %v829_v31 }
 0x6a5   : > { %v831_v34 = vadd.f32 %v830_v33, %v821_v32 }
 0x6a7   : > { %v832_v35 = vsel %vm824_vm1, %v831_v34, 0.0 }
 0x6a8   : > { %834 = vst [vmem:[#allocation9 + $0x1] sm:$0x1] %v832_v35 }
 0x6a9 PF: > { %v1073_v36 = vld [vmem:[#allocation9] ss:$0 sm:$0xff]  ;;  %v1221_v37 = vld [vmem:[%s1455_s3 + $0x38] sm:$0xff]   ;;  %s835_s17 = scalar_lea.vmem [#allocation3], %s1355_s25  ;;  %v1285_v39 = vmov 0.0   ;;  %v1222_v41 = vld [vmem:[%s1455_s3 + $0x30] sm:$0xff]  }
 0x6aa   : > { %v836_v38 = vld [vmem:[%s835_s17] sm:$0xff]  ;;  %1135 = vmatprep.subr.bf16.mxu0 %v1285_v39  ;;  %vm1286_vm2 = vmmov 0   ;;  %s1287_s28 = smov 64   ;;  %v1223_v42 = vld [vmem:[%s1455_s3 + $0x28] sm:$0xff]   ;;  %v1225_v44 = vld [vmem:[%s1455_s3 + $0x18] sm:$0xff]   ;;  %vm964_vm3 = vcmask 31744  }
 0x6ab   : > { %v842_v40 = vmul.f32 %v1073_v36, %v836_v38  ;;  %1136 = vmatpush3.bf16.msra.mxu0 %v1221_v37  ;;  %1151 = vmatprep.mubr.msk.bf16.mxu0 %vm1286_vm2, %v1285_v39  ;;  %v1224_v43 = vld [vmem:[%s1455_s3 + $0x20] sm:$0xff]   ;;  %v1226_v45 = vld [vmem:[%s1455_s3 + $0x10] sm:$0xff]   ;;  %v1227_v46 = vld [vmem:[%s1455_s3 + $0x8] sm:$0xff]  }
 0x6ac   : > { %1137 = vmatprep.subr.bf16.mxu0 %v1285_v39  ;;  %v1228_v47 = vld [vmem:[%s1455_s3] sm:$0xff]  }
 0x6ad   : > { %843 = vrot.lane.b32.xlu0 %v842_v40, %s1287_s28  ;;  %v1075_v54 = vld [vmem:[%s1456_s4 + $0x5] ss:$0 sm:$0xff] }
 0x6af   : > { %1138 = vmatpush3.bf16.msra.mxu0 %v1222_v41  ;;  %v1074_v49 = vld [vmem:[#allocation9 + $0x1] ss:$0 sm:$0xff] }
 0x6b0   : > { %1139 = vmatprep.subr.bf16.mxu0 %v1285_v39 }
 0x6b3   : > { %1140 = vmatpush3.bf16.msra.mxu0 %v1223_v42 }
 0x6b4   : > { %1141 = vmatprep.subr.bf16.mxu0 %v1285_v39 }
 0x6b7   : > { %1142 = vmatpush3.bf16.msra.mxu0 %v1224_v43 }
 0x6b8   : > { %1143 = vmatprep.subr.bf16.mxu0 %v1285_v39 }
 0x6bb   : > { %1144 = vmatpush3.bf16.msra.mxu0 %v1225_v44 }
 0x6bc   : > { %1145 = vmatprep.subr.bf16.mxu0 %v1285_v39 }
 0x6bf   : > { %1146 = vmatpush3.bf16.msra.mxu0 %v1226_v45 }
 0x6c0   : > { %1147 = vmatprep.subr.bf16.mxu0 %v1285_v39 }
 0x6c3   : > { %1148 = vmatpush3.bf16.msra.mxu0 %v1227_v46 }
 0x6c4   : > { %1149 = vmatprep.subr.bf16.mxu0 %v1285_v39 }
 0x6c7   : > { %1150 = vmatpush3.bf16.msra.mxu0 %v1228_v47 }
 0x71f   : > { %v844_v48 = vpop.permute.xlu0 %843 }
 0x720   : > { %v845_v50 = vadd.f32 %v844_v48, %v842_v40 }
 0x722   : > { %v851_v51 = vadd.f32 %v1074_v49, %v845_v50 }
 0x724   : > { %v852_v52 = vmax.f32 %v851_v51, 0.0 }
 0x726   : > { %v854_v53 = vpack.c.bf16 %v852_v52, %v852_v52 }
 0x728   : > { %1152 = vmatmul.mubr.bf16.vlgmr.msra.gmra.mxu0 %v854_v53 }
 0x7e8   : > { %v957_v55 = vpop.f32.mrf.mxu0 }
 0x7e9   : > { %v958_v56 = vadd.f32 %v1075_v54, %v957_v55 }
 0x7ea   : > { %v1153_v57 = vpop.f32.mrf.mxu0 }
 0x7eb   : > { %v963_v58 = vmax.f32 %v958_v56, 0.0 }
 0x7ec   : > { %v960_v59 = vpop.f32.mrf.mxu0 }
 0x7ed   : > { %965 = vst.msk [vmem:[%s1365_s10] sm:$0xff] %vm964_vm3, %v963_v58 }
 0x7ee   : > { %v1154_v60 = vpop.f32.mrf.mxu0 }
 0x7ef PF: > { %s15_s22 = sadd.s32 1, %s1267_s22   ;;  %s1458_s18 = smov %s1259_s20 }
 0x7f0   : > { %p12_p1 = scmp.ge.s32.totalorder %s15_s22, 8   ;;  %s1459_s19 = smov %s1263_s21 }
 0x7f1   : > { %s1460_s20 = smov %s1463_s23  ;;  %s1461_s21 = smov %s1467_s24 }
 0x7f2   :  { %14 = sbr.rel (!%p12_p1) target bundleno = 3 (0x3), region = 102 }

</bundles_post_ra>
